<compile_context>
chip_gen: v7x
topology: tpu7x:2x2x1
jax: 0.10.0
libtpu: 0.0.40
codegen_flags: <defaults>
</compile_context>

<pallas_src>
import functools

import jax
import jax.numpy as jnp
from jax import lax
from jax.experimental import pallas as pl
from jax.experimental.pallas import tpu as pltpu

BN_EPS = 1e-5
LANE = 128
SUBLANE = 8
MAX_BATCH_TILE = 1024


def _round_up(n: int, m: int) -> int:
    return ((n + m - 1) // m) * m


def _vmem_limit_bytes() -> int:
    """Generation-aware scoped-VMEM limit (leave ~25% headroom)."""
    cap = 64 << 20  # conservative fallback ~ v7x per-core VMEM
    try:
        cap = int(pltpu.get_tpu_info().vmem_capacity_bytes)
    except Exception:
        pass
    return max(32 << 20, min((cap * 3) // 4, 100 << 20))


def _pick_batch_tile(batch: int, dp: int, vmem_bytes: int) -> int:
    """VMEM-budget-aware row tile (replaces the old hard 256-row cap)."""
    resident = 2 * dp * dp * 2 + (64 << 10)        # two bf16 (Dp,Dp) weights
    budget = max(vmem_bytes - resident, 4 << 20)
    per_row = dp * 4 * 10                          # streamed tiles + f32 temps
    tb = (budget // per_row) // 16 * 16            # bf16-tile friendly
    tb = max(16, min(MAX_BATCH_TILE, tb))
    if batch <= SUBLANE:
        return SUBLANE                             # single full-array tile
    return min(_round_up(batch, 16), tb)


# --------------------------------------------------------------------------- #
# Kernels
# --------------------------------------------------------------------------- #

def _fused_nobn_kernel(x_ref, wa_ref, ba_ref, wb_ref, bb_ref, o_ref):
    """relu(x @ Wa + ba) @ Wb + bb + x for one (TB, Dp) row tile (no BN)."""
    x = x_ref[...]                      # single load, reused for MXU + skip
    h = jnp.dot(x.astype(jnp.bfloat16), wa_ref[...],
                preferred_element_type=jnp.float32) + ba_ref[...]
    h = jnp.maximum(h, 0.0)
    h = jnp.dot(h.astype(jnp.bfloat16), wb_ref[...],
                preferred_element_type=jnp.float32) + bb_ref[...]
    o_ref[...] = (h + x.astype(jnp.float32)).astype(o_ref.dtype)


def _bn_scale_shift(ssum, ssq, gamma, beta, inv_n):
    """Fold training-mode BN (biased var) + affine into one scale/shift FMA.

    NOTE: E[x^2]-E[x]^2 in f32 is cancellation-prone for large-mean
    activations; fine at O(1) scales (see review)."""
    mean = ssum * inv_n
    var = ssq * inv_n - mean * mean
    scale = gamma * lax.rsqrt(var + BN_EPS)
    shift = beta - mean * scale
    return scale, shift


def _accum_stats(h, ssum_ref, ssq_ref):
    ssum_ref[...] += jnp.sum(h, axis=0, keepdims=True)
    ssq_ref[...] += jnp.sum(h * h, axis=0, keepdims=True)


def _masked_stats(h, ssum_ref, ssq_ref, gi, *, tile_rows, total_rows,
                  first_pad_tile, mask_needed):
    """Accumulate per-feature sum / sum-of-squares, zeroing padded batch rows.
    The mask only runs on tiles that can contain padding (static gate +
    runtime pl.when) and builds the row index as a (TB, 1) iota."""
    if not mask_needed:
        _accum_stats(h, ssum_ref, ssq_ref)
        return

    has_pad = gi >= first_pad_tile

    @pl.when(has_pad)
    def _():
        row = lax.broadcasted_iota(jnp.int32, (tile_rows, 1), 0)
        hv = jnp.where(row < (total_rows - gi * tile_rows), h, 0.0)
        _accum_stats(hv, ssum_ref, ssq_ref)

    @pl.when(jnp.logical_not(has_pad))
    def _():
        _accum_stats(h, ssum_ref, ssq_ref)


def _fc_stats_kernel(x_ref, w_ref, b_ref, h_ref, ssum_ref, ssq_ref, *,
                     nb_per_core, tile_rows, total_rows, first_pad_tile,
                     mask_needed):
    """Pass 1: h1 = x @ Wa + ba (bf16 writeback); per-core partial stats."""
    c = pl.program_id(0)
    j = pl.program_id(1)
    h = jnp.dot(x_ref[...].astype(jnp.bfloat16), w_ref[...],
                preferred_element_type=jnp.float32) + b_ref[...]
    h_ref[...] = h.astype(h_ref.dtype)

    @pl.when(j == 0)
    def _init():
        ssum_ref[...] = jnp.zeros_like(ssum_ref)
        ssq_ref[...] = jnp.zeros_like(ssq_ref)

    _masked_stats(h, ssum_ref, ssq_ref, c * nb_per_core + j,
                  tile_rows=tile_rows, total_rows=total_rows,
                  first_pad_tile=first_pad_tile, mask_needed=mask_needed)


def _bn_relu_fc_stats_kernel(h1_ref, s1_ref, q1_ref, ga_ref, bta_ref,
                             w_ref, b_ref, h2_ref, ssum_ref, ssq_ref, *,
                             inv_n, nb_per_core, tile_rows, total_rows,
                             first_pad_tile, mask_needed):
    """Pass 2: BN_a (scale/shift) -> ReLU -> fc_b ; per-core stats of fc_b."""
    c = pl.program_id(0)
    j = pl.program_id(1)
    # Sum per-core partial statistics from pass 1 -> full-batch scale/shift.
    scale, shift = _bn_scale_shift(jnp.sum(s1_ref[...], axis=0),
                                   jnp.sum(q1_ref[...], axis=0),
                                   ga_ref[...], bta_ref[...], inv_n)
    a = jnp.maximum(h1_ref[...].astype(jnp.float32) * scale + shift, 0.0)
    h = jnp.dot(a.astype(jnp.bfloat16), w_ref[...],
                preferred_element_type=jnp.float32) + b_ref[...]
    h2_ref[...] = h.astype(h2_ref.dtype)

    @pl.when(j == 0)
    def _init():
        ssum_ref[...] = jnp.zeros_like(ssum_ref)
        ssq_ref[...] = jnp.zeros_like(ssq_ref)

    _masked_stats(h, ssum_ref, ssq_ref, c * nb_per_core + j,
                  tile_rows=tile_rows, total_rows=total_rows,
                  first_pad_tile=first_pad_tile, mask_needed=mask_needed)


def _bn_residual_kernel(h2_ref, s2_ref, q2_ref, gb_ref, btb_ref, x_ref, o_ref,
                        *, inv_n):
    """Pass 3: BN_b (scale/shift) + residual add."""
    scale, shift = _bn_scale_shift(jnp.sum(s2_ref[...], axis=0),
                                   jnp.sum(q2_ref[...], axis=0),
                                   gb_ref[...], btb_ref[...], inv_n)
    o_ref[...] = (h2_ref[...].astype(jnp.float32) * scale + shift
                  + x_ref[...].astype(jnp.float32)).astype(o_ref.dtype)


# --------------------------------------------------------------------------- #
# Wrapper
# --------------------------------------------------------------------------- #

def resnet_block_forward(x, params, *, batch_norm: bool):
    """Run the ResnetBlock forward. x: (B, D) f32; params from init_params."""
    B, D = x.shape
    Dp = int(params["dim_padded"])
    assert D == int(params["dim"])
    f32 = jnp.float32

    vmem = _vmem_limit_bytes()
    TB = _pick_batch_tile(B, Dp, vmem)
    # TODO(synk): for Dp >= ~2816 on v7x the two resident (Dp,Dp) bf16 weights
    # exceed VMEM even single-buffered; a K/N-tiled weight grid is needed there.

    nb0 = -(-B // TB)                               # ceil-div
    ncore = 2 if (batch_norm and nb0 >= 2) else 1   # per-core partial stats
    nb_per_core = -(-nb0 // ncore)
    nb = ncore * nb_per_core
    Bp = nb * TB

    need_pad = (Bp != B) or (Dp != D)
    xp = (jnp.zeros((Bp, Dp), f32).at[:B, :D].set(x.astype(f32))
          if need_pad else x.astype(f32))

    wa, ba = params["wa_p"], params["ba_p"]
    wb, bb = params["wb_p"], params["bb_p"]

    resident = pl.Buffered(1)       # constant-index_map inputs: single buffer
    vmem_cp = dict(vmem_limit_bytes=vmem)

    if not batch_norm:
        row_spec = pl.BlockSpec((TB, Dp), lambda i: (i, 0))
        w_spec = pl.BlockSpec((Dp, Dp), lambda i: (0, 0), pipeline_mode=resident)
        v_spec = pl.BlockSpec((1, Dp), lambda i: (0, 0), pipeline_mode=resident)
        out = pl.pallas_call(
            _fused_nobn_kernel,
            grid=(nb,),
            in_specs=[row_spec, w_spec, v_spec, w_spec, v_spec],
            out_specs=row_spec,
            out_shape=jax.ShapeDtypeStruct((Bp, Dp), x.dtype),
            compiler_params=pltpu.CompilerParams(
                dimension_semantics=("parallel",), **vmem_cp),
        )(xp, wa, ba, wb, bb)
        return out[:B, :D] if need_pad else out

    # ---- BatchNorm path: 3 batch-tiled passes (training-mode batch stats) --- #
    # TODO(synk): nn.BatchNorm1d running_mean/running_var buffer updates
    # (training-time side effect) are not emitted; forward uses batch stats.
    ga, bta = params["gamma_a_p"], params["beta_a_p"]
    gb, btb = params["gamma_b_p"], params["beta_b_p"]

    static = dict(nb_per_core=nb_per_core, tile_rows=TB, total_rows=B,
                  first_pad_tile=B // TB, mask_needed=(Bp != B))

    row2 = pl.BlockSpec((TB, Dp), lambda c, j: (c * nb_per_core + j, 0))
    w2 = pl.BlockSpec((Dp, Dp), lambda c, j: (0, 0), pipeline_mode=resident)
    v2 = pl.BlockSpec((1, Dp), lambda c, j: (0, 0), pipeline_mode=resident)
    stat_in = pl.BlockSpec((ncore, 1, Dp), lambda c, j: (0, 0, 0),
                           pipeline_mode=resident)
    stat_out = pl.BlockSpec((None, 1, Dp), lambda c, j: (c, 0, 0))
    stats_shape = jax.ShapeDtypeStruct((ncore, 1, Dp), f32)
    cp2 = pltpu.CompilerParams(
        dimension_semantics=("parallel", "arbitrary"), **vmem_cp)

    # Pass 1: fc_a + per-core batch statistics of its output (bf16 h1 stream).
    h1, s1, q1 = pl.pallas_call(
        functools.partial(_fc_stats_kernel, **static),
        grid=(ncore, nb_per_core),
        in_specs=[row2, w2, v2],
        out_specs=[row2, stat_out, stat_out],
        out_shape=(jax.ShapeDtypeStruct((Bp, Dp), jnp.bfloat16),
                   stats_shape, stats_shape),
        compiler_params=cp2,
    )(xp, wa, ba)

    # Pass 2: BN_a + ReLU + fc_b + per-core statistics of its output.
    h2, s2, q2 = pl.pallas_call(
        functools.partial(_bn_relu_fc_stats_kernel, inv_n=1.0 / B, **static),
        grid=(ncore, nb_per_core),
        in_specs=[row2, stat_in, stat_in, v2, v2, w2, v2],
        out_specs=[row2, stat_out, stat_out],
        out_shape=(jax.ShapeDtypeStruct((Bp, Dp), jnp.bfloat16),
                   stats_shape, stats_shape),
        compiler_params=cp2,
    )(h1, s1, q1, ga, bta, wb, bb)

    # Pass 3: BN_b + residual (batch axis "parallel").
    row1 = pl.BlockSpec((TB, Dp), lambda i: (i, 0))
    v1 = pl.BlockSpec((1, Dp), lambda i: (0, 0), pipeline_mode=resident)
    stat1 = pl.BlockSpec((ncore, 1, Dp), lambda i: (0, 0, 0),
                         pipeline_mode=resident)
    out = pl.pallas_call(
        functools.partial(_bn_residual_kernel, inv_n=1.0 / B),
        grid=(nb,),
        in_specs=[row1, stat1, stat1, v1, v1, row1],
        out_specs=row1,
        out_shape=jax.ShapeDtypeStruct((Bp, Dp), x.dtype),
        compiler_params=pltpu.CompilerParams(
            dimension_semantics=("parallel",), **vmem_cp),
    )(h2, s2, q2, gb, btb, xp)

    return out[:B, :D] if need_pad else out


# --------------------------------------------------------------------------- #
# Params / reference / demo
# --------------------------------------------------------------------------- #

def init_params(key, resnet_dim):
    """Deterministic init (PyTorch Linear uniform fan-in scale).

    Weights/vectors are also stored pre-padded to a 128-lane multiple, laid
    out as (in, out) and pre-cast to bf16, so the forward wrapper never pads
    or converts parameters (padding hoisted out of the hot path)."""
    k = jax.random.split(key, 4)
    bound = 1.0 / float(resnet_dim) ** 0.5
    shape = (resnet_dim, resnet_dim)
    f32 = jnp.float32
    wa = jax.random.uniform(k[0], shape, f32, -bound, bound)
    ba = jax.random.uniform(k[1], (resnet_dim,), f32, -bound, bound)
    wb = jax.random.uniform(k[2], shape, f32, -bound, bound)
    bb = jax.random.uniform(k[3], (resnet_dim,), f32, -bound, bound)
    gamma = jnp.ones((resnet_dim,), f32)
    beta = jnp.zeros((resnet_dim,), f32)

    dp = _round_up(resnet_dim, LANE)

    def pad_w(w):   # (in, out) -> (Dp, Dp) bf16
        return (jnp.zeros((dp, dp), jnp.bfloat16)
                .at[:resnet_dim, :resnet_dim].set(w.astype(jnp.bfloat16)))

    def pad_v(v, fill=0.0):   # (D,) -> (1, Dp) f32
        return jnp.full((1, dp), fill, f32).at[0, :resnet_dim].set(v)

    return {
        "dim": resnet_dim, "dim_padded": dp,
        # unpadded copies (used by the pure-JAX reference)
        "wa": wa, "ba": ba, "wb": wb, "bb": bb,
        "gamma_a": gamma, "beta_a": beta, "gamma_b": gamma, "beta_b": beta,
        # pre-padded, MXU-ready copies consumed by the kernels
        "wa_p": pad_w(wa), "ba_p": pad_v(ba),
        "wb_p": pad_w(wb), "bb_p": pad_v(bb),
        "gamma_a_p": pad_v(gamma, 1.0), "beta_a_p": pad_v(beta),
        "gamma_b_p": pad_v(gamma, 1.0), "beta_b_p": pad_v(beta),
    }


def _reference(x, p, batch_norm):
    """Pure-JAX emulation of the kernels' mixed-precision forward
    (bf16 MXU operands, bf16 inter-pass streams, f32 accumulation / BN)."""
    f32, bf16 = jnp.float32, jnp.bfloat16

    def mm(a, w):
        return jnp.dot(a.astype(bf16).astype(f32), w.astype(bf16).astype(f32),
                       preferred_element_type=f32)

    def bn(h, gamma, beta):
        # Stats from the f32 pre-writeback values; normalization applied to
        # the bf16-rounded stream the next pass actually reads.
        mean = h.mean(0, keepdims=True)
        var = (h * h).mean(0, keepdims=True) - mean * mean
        scale = gamma * lax.rsqrt(var + BN_EPS)
        shift = beta - mean * scale
        hq = h.astype(bf16).astype(f32)
        return hq * scale + shift

    skip = x.astype(f32)
    h = mm(x, p["wa"]) + p["ba"]
    if batch_norm:
        h = bn(h, p["gamma_a"], p["beta_a"])
    h = jnp.maximum(h, 0.0)
    h = mm(h, p["wb"]) + p["bb"]
    if batch_norm:
        h = bn(h, p["gamma_b"], p["beta_b"])
    return h + skip


if __name__ == "__main__":
    key = jax.random.PRNGKey(0)
    k_x, k_p = jax.random.split(key)

    batch = 8
    resnet_dim = 32

    x = jax.random.normal(k_x, (batch, resnet_dim), jnp.float32)
    params = init_params(k_p, resnet_dim)

    # batch_norm=True path (training-mode batch statistics, bf16 h1/h2 streams)
    out_bn = jax.block_until_ready(
        resnet_block_forward(x, params, batch_norm=True))
    ref_bn = _reference(x, params, True)
    assert out_bn.shape == (batch, resnet_dim)
    err_bn = float(jnp.max(jnp.abs(out_bn - ref_bn)))
    # Looser tolerance: the BN path deliberately streams bf16 intermediates.
    assert jnp.allclose(out_bn, ref_bn, atol=2e-2, rtol=2e-2), (
        f"BN path max abs err {err_bn}")

    # batch_norm=False path
    out_nb = jax.block_until_ready(
        resnet_block_forward(x, params, batch_norm=False))
    ref_nb = _reference(x, params, False)
    err_nb = float(jnp.max(jnp.abs(out_nb - ref_nb)))
    assert jnp.allclose(out_nb, ref_nb, atol=1e-4, rtol=1e-4), (
        f"no-BN path max abs err {err_nb}")

    print("KERNEL_OK")
</pallas_src>

<mosaic_0001>
module attributes {stable_mosaic.version = 11 : i64} {
  func.func @_fc_stats_kernel(%arg0: i32, %arg1: i32, %arg2: memref<8x128xf32, #tpu.memory_space<vmem>>, %arg3: memref<128x128xbf16, #tpu.memory_space<vmem>>, %arg4: memref<1x128xf32, #tpu.memory_space<vmem>>, %arg5: memref<8x128xbf16, #tpu.memory_space<vmem>>, %arg6: memref<1x1x128xf32, #tpu.memory_space<vmem>>, %arg7: memref<1x1x128xf32, #tpu.memory_space<vmem>>) attributes {dimension_semantics = [#tpu.dimension_semantics<parallel>, #tpu.dimension_semantics<arbitrary>], iteration_bounds = array<i64: 1, 1>, scalar_prefetch = 0 : i64, scratch_operands = 0 : i64, tpu.core_type = #tpu.core_type<tc>, window_params = [{transform_indices = @transform_0, window_bounds = array<i64: 8, 128>}, {pipeline_mode = #tpu.pipeline_mode<synchronous>, transform_indices = @transform_1, window_bounds = array<i64: 128, 128>}, {pipeline_mode = #tpu.pipeline_mode<synchronous>, transform_indices = @transform_2, window_bounds = array<i64: 1, 128>}, {transform_indices = @transform_3, window_bounds = array<i64: 8, 128>}, {transform_indices = @transform_4, window_bounds = array<i64: 1, 1, 128>}, {transform_indices = @transform_5, window_bounds = array<i64: 1, 1, 128>}]} {
    %c0 = arith.constant 0 : index
    %c0_0 = arith.constant 0 : index
    %0 = vector.load %arg2[%c0, %c0_0] : memref<8x128xf32, #tpu.memory_space<vmem>>, vector<8x128xf32>
    %1 = arith.truncf %0 : vector<8x128xf32> to vector<8x128xbf16>
    %c0_1 = arith.constant 0 : index
    %c0_2 = arith.constant 0 : index
    %2 = vector.load %arg3[%c0_1, %c0_2] : memref<128x128xbf16, #tpu.memory_space<vmem>>, vector<128x128xbf16>
    %cst = arith.constant dense<0.000000e+00> : vector<8x128xf32>
    %3 = tpu.matmul %1, %2, %cst {dimension_numbers = #tpu.dot_dimension_numbers<[1], [0], [0], [1], [0, 0, 1, 1], [], []>} : vector<8x128xbf16>, vector<128x128xbf16>, vector<8x128xf32> -> vector<8x128xf32>
    %c0_3 = arith.constant 0 : index
    %c0_4 = arith.constant 0 : index
    %4 = vector.load %arg4[%c0_3, %c0_4] : memref<1x128xf32, #tpu.memory_space<vmem>>, vector<1x128xf32>
    %5 = vector.broadcast %4 : vector<1x128xf32> to vector<8x128xf32>
    %6 = arith.addf %3, %5 : vector<8x128xf32>
    %7 = arith.truncf %6 : vector<8x128xf32> to vector<8x128xbf16>
    %c0_5 = arith.constant 0 : index
    %c0_6 = arith.constant 0 : index
    %8 = vector.load %arg5[%c0_5, %c0_6] : memref<8x128xbf16, #tpu.memory_space<vmem>>, vector<8x128xbf16>
    tpu.vector_store %arg5[%c0_5, %c0_6], %7 {strides = array<i32>} : memref<8x128xbf16, #tpu.memory_space<vmem>>, vector<8x128xbf16>,
    %c0_i32 = arith.constant 0 : i32
    %9 = arith.cmpi eq, %arg1, %c0_i32 : i32
    %10 = arith.extui %9 : i1 to i32
    %c0_i32_7 = arith.constant 0 : i32
    %11 = arith.cmpi ne, %10, %c0_i32_7 : i32
    scf.if %11 {
      %cst_22 = arith.constant 0.000000e+00 : f32
      %29 = vector.broadcast %cst_22 : f32 to vector<1x128xf32>
      %c0_23 = arith.constant 0 : index
      %c0_24 = arith.constant 0 : index
      %c0_25 = arith.constant 0 : index
      %30 = vector.load %arg6[%c0_23, %c0_24, %c0_25] : memref<1x1x128xf32, #tpu.memory_space<vmem>>, vector<1x1x128xf32>
      %31 = vector.shape_cast %30 : vector<1x1x128xf32> to vector<1x128xf32>
      %32 = vector.shape_cast %29 : vector<1x128xf32> to vector<1x1x128xf32>
      tpu.vector_store %arg6[%c0_23, %c0_24, %c0_25], %32 {strides = array<i32>} : memref<1x1x128xf32, #tpu.memory_space<vmem>>, vector<1x1x128xf32>,
      %cst_26 = arith.constant 0.000000e+00 : f32
      %33 = vector.broadcast %cst_26 : f32 to vector<1x128xf32>
      %c0_27 = arith.constant 0 : index
      %c0_28 = arith.constant 0 : index
      %c0_29 = arith.constant 0 : index
      %34 = vector.load %arg7[%c0_27, %c0_28, %c0_29] : memref<1x1x128xf32, #tpu.memory_space<vmem>>, vector<1x1x128xf32>
      %35 = vector.shape_cast %34 : vector<1x1x128xf32> to vector<1x128xf32>
      %36 = vector.shape_cast %33 : vector<1x128xf32> to vector<1x1x128xf32>
      tpu.vector_store %arg7[%c0_27, %c0_28, %c0_29], %36 {strides = array<i32>} : memref<1x1x128xf32, #tpu.memory_space<vmem>>, vector<1x1x128xf32>,
    } else {
    }
    %c0_8 = arith.constant 0 : index
    %c0_9 = arith.constant 0 : index
    %c0_10 = arith.constant 0 : index
    %12 = vector.load %arg6[%c0_8, %c0_9, %c0_10] : memref<1x1x128xf32, #tpu.memory_space<vmem>>, vector<1x1x128xf32>
    %13 = vector.shape_cast %12 : vector<1x1x128xf32> to vector<1x128xf32>
    %cst_11 = arith.constant dense<0.000000e+00> : vector<128xf32>
    %14 = vector.multi_reduction <add>, %6, %cst_11 [0] : vector<8x128xf32> to vector<128xf32>
    %15 = vector.shape_cast %14 : vector<128xf32> to vector<1x128xf32>
    %16 = arith.addf %13, %15 : vector<1x128xf32>
    %c0_12 = arith.constant 0 : index
    %c0_13 = arith.constant 0 : index
    %c0_14 = arith.constant 0 : index
    %17 = vector.load %arg6[%c0_12, %c0_13, %c0_14] : memref<1x1x128xf32, #tpu.memory_space<vmem>>, vector<1x1x128xf32>
    %18 = vector.shape_cast %17 : vector<1x1x128xf32> to vector<1x128xf32>
    %19 = vector.shape_cast %16 : vector<1x128xf32> to vector<1x1x128xf32>
    tpu.vector_store %arg6[%c0_12, %c0_13, %c0_14], %19 {strides = array<i32>} : memref<1x1x128xf32, #tpu.memory_space<vmem>>, vector<1x1x128xf32>,
    %c0_15 = arith.constant 0 : index
    %c0_16 = arith.constant 0 : index
    %c0_17 = arith.constant 0 : index
    %20 = vector.load %arg7[%c0_15, %c0_16, %c0_17] : memref<1x1x128xf32, #tpu.memory_space<vmem>>, vector<1x1x128xf32>
    %21 = vector.shape_cast %20 : vector<1x1x128xf32> to vector<1x128xf32>
    %22 = arith.mulf %6, %6 : vector<8x128xf32>
    %cst_18 = arith.constant dense<0.000000e+00> : vector<128xf32>
    %23 = vector.multi_reduction <add>, %22, %cst_18 [0] : vector<8x128xf32> to vector<128xf32>
    %24 = vector.shape_cast %23 : vector<128xf32> to vector<1x128xf32>
    %25 = arith.addf %21, %24 : vector<1x128xf32>
    %c0_19 = arith.constant 0 : index
    %c0_20 = arith.constant 0 : index
    %c0_21 = arith.constant 0 : index
    %26 = vector.load %arg7[%c0_19, %c0_20, %c0_21] : memref<1x1x128xf32, #tpu.memory_space<vmem>>, vector<1x1x128xf32>
    %27 = vector.shape_cast %26 : vector<1x1x128xf32> to vector<1x128xf32>
    %28 = vector.shape_cast %25 : vector<1x128xf32> to vector<1x1x128xf32>
    tpu.vector_store %arg7[%c0_19, %c0_20, %c0_21], %28 {strides = array<i32>} : memref<1x1x128xf32, #tpu.memory_space<vmem>>, vector<1x1x128xf32>,
    return
  }
  func.func @transform_0(%arg0: i32, %arg1: i32) -> (i32, i32) {
    %c1_i32 = arith.constant 1 : i32
    %0 = arith.muli %arg0, %c1_i32 : i32
    %1 = arith.addi %0, %arg1 : i32
    %c0_i32 = arith.constant 0 : i32
    %c0_i32_0 = arith.constant 0 : i32
    return %1, %c0_i32 : i32, i32
  }
  func.func @transform_1(%arg0: i32, %arg1: i32) -> (i32, i32) {
    %c0_i32 = arith.constant 0 : i32
    %c0_i32_0 = arith.constant 0 : i32
    %c0_i32_1 = arith.constant 0 : i32
    return %c0_i32, %c0_i32_0 : i32, i32
  }
  func.func @transform_2(%arg0: i32, %arg1: i32) -> (i32, i32) {
    %c0_i32 = arith.constant 0 : i32
    %c0_i32_0 = arith.constant 0 : i32
    %c0_i32_1 = arith.constant 0 : i32
    return %c0_i32, %c0_i32_0 : i32, i32
  }
  func.func @transform_3(%arg0: i32, %arg1: i32) -> (i32, i32) {
    %c1_i32 = arith.constant 1 : i32
    %0 = arith.muli %arg0, %c1_i32 : i32
    %1 = arith.addi %0, %arg1 : i32
    %c0_i32 = arith.constant 0 : i32
    %c0_i32_0 = arith.constant 0 : i32
    return %1, %c0_i32 : i32, i32
  }
  func.func @transform_4(%arg0: i32, %arg1: i32) -> (i32, i32, i32) {
    %c0_i32 = arith.constant 0 : i32
    %c0_i32_0 = arith.constant 0 : i32
    %c0_i32_1 = arith.constant 0 : i32
    return %arg0, %c0_i32, %c0_i32_0 : i32, i32, i32
  }
  func.func @transform_5(%arg0: i32, %arg1: i32) -> (i32, i32, i32) {
    %c0_i32 = arith.constant 0 : i32
    %c0_i32_0 = arith.constant 0 : i32
    %c0_i32_1 = arith.constant 0 : i32
    return %arg0, %c0_i32, %c0_i32_0 : i32, i32, i32
  }
}

</mosaic_0001>

<bundles_post_ra>
// kernel: tpu_custom_call.1
= control target key start
LH: loop header
LB: loop body
LE: loop exit
PB: predicated region body
PF: predicated region fallthrough
CT: control target
= control target key end

     0   :  { %11 = vsyncpa [#allocation3], 0  ;;  %s527_s0 = inlined_call_operand.hbm [shape: f32[8,128], index: 0, kind: input, shape index: {}]   ;;  %s528_s1 = inlined_call_operand.hbm [shape: bf16[128,128], index: 1, kind: input, shape index: {}]   ;;  %s529_s2 = inlined_call_operand.vmem [shape: f32[1,128], index: 2, kind: input, shape index: {}]   ;;  %s530_s3 = inlined_call_operand.hbm [shape: bf16[8,128], index: 3, kind: output, shape index: {0}]   ;;  %s531_s4 = inlined_call_operand.hbm [shape: f32[1,1,128], index: 4, kind: output, shape index: {1}]   ;;  %s532_s5 = inlined_call_operand.hbm [shape: f32[1,1,128], index: 5, kind: output, shape index: {2}]  }
   0x1   :  { %12 = vsyncpa [#allocation6], 0 }
   0x2   :  { %13 = vsyncpa [#allocation4], 0 }
   0x3   :  { %14 = vsyncpa [#allocation9], 0  ;;  %s410_s18 = smov [#allocation2]   ;;  %s411_s20 = smov [#allocation5]  }
   0x4   :  { %s24_s19 = sshll.u32 %s410_s18, 4  ;;  %s33_s21 = sshll.u32 %s411_s20, 4  ;;  %s25_s19 = int_to_ptr.vmem [resolvable:$true] %s24_s19  ;;  %s449_s21 = int_to_ptr.vmem [resolvable:$true] %s33_s21 }
   0x5   :  { %s292_s24 = scalar_lea.hbm %s527_s0, 128 }
   0x6   :  { %p293_p0 = scmp.ne.s32.totalorder %s527_s0, %s292_s24  ;;  %p296_p1 = scmp.lt.u32.totalorder %s292_s24, %s527_s0 }
   0x8   :  { %p298_p2 = pnand %p296_p1, %p293_p0 }
   0xa   :  { %301 = shalt.err (!%p298_p2)
}
   0xb   :  { %s302_s29 = scalar_lea.vmem %s25_s19, 128  ;;  %p307_p4 = scmp.lt.s32.totalorder %s25_s19, %s25_s19 }
   0xc   :  { %p303_p3 = scmp.ne.s32.totalorder %s25_s19, %s302_s29  ;;  %p308_p5 = scmp.lt.s32.totalorder %s302_s29, %s302_s29 }
   0xe   :  { %p309_p6 = por %p308_p5, %p307_p4 }
  0x10   :  { %p310_p7 = pnand %p309_p6, %p303_p3 }
  0x12   :  { %313 = shalt.err (!%p310_p7)
}
  0x13   :  { %27 = dma.hbm_to_vmem [thread:$0]  %s527_s0, 128, %s25_s19, [#allocation3]  }
  0x14   :  { %s314_s9 = scalar_lea.hbm %s528_s1, 1024 }
  0x15   :  { %p315_p8 = scmp.ne.s32.totalorder %s528_s1, %s314_s9  ;;  %p318_p9 = scmp.lt.u32.totalorder %s314_s9, %s528_s1 }
  0x17   :  { %p320_p10 = pnand %p318_p9, %p315_p8 }
  0x19   :  { %323 = shalt.err (!%p320_p10)
}
  0x1a   :  { %s324_s14 = scalar_lea.vmem %s449_s21, 1024  ;;  %p329_p12 = scmp.lt.s32.totalorder %s449_s21, %s449_s21 }
  0x1b   :  { %p325_p11 = scmp.ne.s32.totalorder %s449_s21, %s324_s14  ;;  %p330_p13 = scmp.lt.s32.totalorder %s324_s14, %s324_s14 }
  0x1d   :  { %p331_p0 = por %p330_p13, %p329_p12 }
  0x1f   :  { %p332_p1 = pnand %p331_p0, %p325_p11 }
  0x21   :  { %335 = shalt.err (!%p332_p1)
}
  0x22   :  { %s412_s0 = smov 64   ;;  %s413_s15 = smov 4  }
  0x23   :  { %39 = dma.hbm_to_vmem [thread:$0]  %s528_s1, 1024, %s449_s21, [#allocation6], %s412_s0, %s412_s0, %s413_s15  }
  0x24   :  { %402 = dma.done.wait [#allocation3], 128  }
  0x25   :  { %403 = vsyncadd [#allocation3], 4294967168 }
  0x26   :  { %404 = dma.done.wait [#allocation6], 1024  }
  0x27   :  { %405 = vsyncadd [#allocation6], 4294966272  ;;  %v414_v0 = vmov 0.0   ;;  %vm415_vm0 = vmmov 0   ;;  %v284_v1 = vld [vmem:[#allocation5] sm:$0xff]   ;;  %v285_v2 = vld [vmem:[#allocation5 + $0x8] sm:$0xff]  }
  0x28   :  { %255 = vmatprep.subr.bf16.mxu0 %v414_v0  ;;  %170 = vst [vmem:[#allocation8] sm:$0x1] %v414_v0  ;;  %171 = vst [vmem:[#allocation10] sm:$0x1] %v414_v0  ;;  %271 = vmatprep.mubr.msk.bf16.mxu0 %vm415_vm0, %v414_v0  ;;  %v286_v3 = vld [vmem:[#allocation5 + $0x10] sm:$0xff]   ;;  %v287_v4 = vld [vmem:[#allocation5 + $0x18] sm:$0xff]  }
  0x29   :  { %256 = vmatpush3.bf16.msra.mxu0 %v284_v1  ;;  %v288_v5 = vld [vmem:[#allocation5 + $0x20] sm:$0xff]   ;;  %v289_v6 = vld [vmem:[#allocation5 + $0x28] sm:$0xff]   ;;  %v290_v7 = vld [vmem:[#allocation5 + $0x30] sm:$0xff]   ;;  %s416_s19 = smov [#allocation7]  }
  0x2a   :  { %257 = vmatprep.subr.bf16.mxu0 %v414_v0  ;;  %v291_v8 = vld [vmem:[#allocation5 + $0x38] sm:$0xff]   ;;  %s200_s20 = sshll.u32 %s416_s19, 4  ;;  %s201_s20 = int_to_ptr.vmem [resolvable:$true] %s200_s20 }
  0x2b   :  { %v51_v9 = vld [vmem:[#allocation2] sm:$0xff]  ;;  %s336_s21 = scalar_lea.vmem %s201_s20, 64  ;;  %p341_p3 = scmp.lt.s32.totalorder %s201_s20, %s201_s20 }
  0x2c   :  { %v52_v10 = vpack.c.bf16 %v51_v9, %v51_v9  ;;  %v237_v11 = vld [vmem:[%s529_s2] ss:$0 sm:$0xff]  ;;  %p337_p2 = scmp.ne.s32.totalorder %s201_s20, %s336_s21  ;;  %p342_p4 = scmp.lt.s32.totalorder %s336_s21, %s336_s21 }
  0x2d   :  { %258 = vmatpush3.bf16.msra.mxu0 %v285_v2 }
  0x2e   :  { %259 = vmatprep.subr.bf16.mxu0 %v414_v0  ;;  %p343_p5 = por %p342_p4, %p341_p3 }
  0x30   :  { %p344_p6 = pnand %p343_p5, %p337_p2 }
  0x31   :  { %260 = vmatpush3.bf16.msra.mxu0 %v286_v3 }
  0x32   :  { %261 = vmatprep.subr.bf16.mxu0 %v414_v0 }
  0x35   :  { %262 = vmatpush3.bf16.msra.mxu0 %v287_v4 }
  0x36   :  { %263 = vmatprep.subr.bf16.mxu0 %v414_v0 }
  0x39   :  { %264 = vmatpush3.bf16.msra.mxu0 %v288_v5 }
  0x3a   :  { %265 = vmatprep.subr.bf16.mxu0 %v414_v0 }
  0x3d   :  { %266 = vmatpush3.bf16.msra.mxu0 %v289_v6 }
  0x3e   :  { %267 = vmatprep.subr.bf16.mxu0 %v414_v0 }
  0x41   :  { %268 = vmatpush3.bf16.msra.mxu0 %v290_v7 }
  0x42   :  { %269 = vmatprep.subr.bf16.mxu0 %v414_v0 }
  0x45   :  { %270 = vmatpush3.bf16.msra.mxu0 %v291_v8 }
  0x48   :  { %272 = vmatmul.mubr.bf16.vlgmr.msra.gmra.mrb[0].mxu0 %v52_v10 }
 0x11b   :  { %v158_v12 = vpop.f32.mrb[0].mxu0 }
 0x11c   :  { %v159_v13 = vadd.f32 %v237_v11, %v158_v12  ;;  %v273_v14 = vpop.f32.mrb[1].mxu0 }
 0x11d   :  { %v161_v15 = vpop.f32.mrb[2].mxu0 }
 0x11e   :  { %v173_v16 = vrot.slane %v159_v13, 4  ;;  %v182_v17 = vmul.f32 %v159_v13, %v159_v13  ;;  %v274_v18 = vpop.f32.mrb[3].mxu0  ;;  %v164_v19 = vpack.c.bf16 %v159_v13, %v159_v13 }
 0x120   :  { %v174_v20 = vadd.f32 %v173_v16, %v159_v13  ;;  %v183_v21 = vrot.slane %v182_v17, 4  ;;  %165 = vst [vmem:[#allocation7] sm:$0xf] %v164_v19 }
 0x121   :  { %347 = shalt.err (!%p344_p6)
}
 0x122   :  { %s348_s23 = scalar_lea.hbm %s530_s3, 64 }
 0x123   :  { %p349_p7 = scmp.ne.s32.totalorder %s530_s3, %s348_s23  ;;  %p352_p8 = scmp.lt.u32.totalorder %s348_s23, %s530_s3 }
 0x125   :  { %p354_p9 = pnand %p352_p8, %p349_p7 }
 0x127   :  { %357 = shalt.err (!%p354_p9)
}
 0x128   :  { %203 = dma.vmem_to_hbm [thread:$0]  %s201_s20, 64, %s530_s3, [#allocation4]   ;;  %v175_v22 = vrot.slane %v174_v20, 2  ;;  %v184_v23 = vadd.f32 %v183_v21, %v182_v17  ;;  %v172_v28 = vld [vmem:[#allocation8] sm:$0x1] }
 0x129   :  { %s417_s30 = smov [#allocation8]   ;;  %v181_v31 = vld [vmem:[#allocation10] sm:$0x1]  ;;  %s418_s7 = smov [#allocation10]  }
 0x12a   :  { %v176_v24 = vadd.f32 %v175_v22, %v174_v20  ;;  %v185_v25 = vrot.slane %v184_v23, 2  ;;  %s210_s6 = sshll.u32 %s417_s30, 4  ;;  %s220_s8 = sshll.u32 %s418_s7, 4  ;;  %s211_s6 = int_to_ptr.vmem [resolvable:$true] %s210_s6  ;;  %s495_s8 = int_to_ptr.vmem [resolvable:$true] %s220_s8 }
 0x12b   :  { %s358_s3 = scalar_lea.vmem %s211_s6, 16  ;;  %s362_s9 = scalar_lea.vmem %s211_s6, 32 }
 0x12c   :  { %v177_v26 = vrot.slane %v176_v24, 1  ;;  %v186_v27 = vadd.f32 %v185_v25, %v184_v23  ;;  %p359_p10 = scmp.ne.s32.totalorder %s211_s6, %s358_s3  ;;  %p363_p11 = scmp.lt.s32.totalorder %s211_s6, %s211_s6 }
 0x12d   :  { %p364_p12 = scmp.lt.s32.totalorder %s362_s9, %s358_s3 }
 0x12e   :  { %v178_v29 = vadd.f32 %v177_v26, %v176_v24  ;;  %v187_v30 = vrot.slane %v186_v27, 1 }
 0x12f   :  { %p365_p13 = por %p364_p12, %p363_p11 }
 0x130   :  { %v179_v32 = vadd.f32 %v178_v29, %v172_v28  ;;  %v188_v33 = vadd.f32 %v187_v30, %v186_v27 }
 0x131   :  { %p366_p0 = pnand %p365_p13, %p359_p10 }
 0x132   :  { %180 = vst [vmem:[#allocation8] sm:$0x1] %v179_v32  ;;  %v189_v34 = vadd.f32 %v188_v33, %v181_v31 }
 0x133   :  { %369 = shalt.err (!%p366_p0)
}
 0x134   :  { %s370_s12 = scalar_lea.hbm %s531_s4, 16 }
 0x135   :  { %p371_p1 = scmp.ne.s32.totalorder %s531_s4, %s370_s12  ;;  %p374_p2 = scmp.lt.u32.totalorder %s370_s12, %s531_s4 }
 0x137   :  { %p376_p3 = pnand %p374_p2, %p371_p1 }
 0x139   :  { %379 = shalt.err (!%p376_p3)
}
 0x13a   :  { %213 = dma.vmem_to_hbm [thread:$0]  %s211_s6, 16, %s531_s4, [#allocation9]   ;;  %190 = vst [vmem:[#allocation10] sm:$0x1] %v189_v34 }
 0x13b   :  { %s380_s1 = scalar_lea.vmem %s495_s8, 16  ;;  %s384_s18 = scalar_lea.vmem %s495_s8, 32 }
 0x13c   :  { %p381_p4 = scmp.ne.s32.totalorder %s495_s8, %s380_s1  ;;  %p385_p5 = scmp.lt.s32.totalorder %s495_s8, %s495_s8 }
 0x13d   :  { %p386_p6 = scmp.lt.s32.totalorder %s384_s18, %s380_s1 }
 0x13f   :  { %p387_p7 = por %p386_p6, %p385_p5 }
 0x141   :  { %p388_p8 = pnand %p387_p7, %p381_p4 }
 0x143   :  { %391 = shalt.err (!%p388_p8)
}
 0x144   :  { %s392_s21 = scalar_lea.hbm %s532_s5, 16 }
 0x145   :  { %p393_p9 = scmp.ne.s32.totalorder %s532_s5, %s392_s21  ;;  %p396_p10 = scmp.lt.u32.totalorder %s392_s21, %s532_s5 }
 0x147   :  { %p398_p11 = pnand %p396_p10, %p393_p9 }
 0x149   :  { %401 = shalt.err (!%p398_p11)
}
 0x14a   :  { %223 = dma.vmem_to_hbm [thread:$0]  %s495_s8, 16, %s532_s5, [#allocation9]  }
 0x14b   :  { %406 = dma.done.wait [#allocation4], 64  }
 0x14c   :  { %407 = vsyncadd [#allocation4], 4294967232 }
 0x14d   :  { %408 = dma.done.wait [#allocation9], 32  }
 0x14e   :  { %409 = vsyncadd [#allocation9], 4294967264 }
 0x14f   :  { %233 = vsyncpa [#allocation3], 1 }
 0x150   :  { %234 = vsyncpa [#allocation6], 1 }
 0x151   :  { %235 = vsyncpa [#allocation4], 1 }
 0x152   :  { %236 = vsyncpa [#allocation9], 1 }

</bundles_post_ra>
